<compile_context>
chip_gen: v5e
topology: v5e:2x2
jax: 0.10.0
libtpu: 0.0.40
codegen_flags: <defaults>
</compile_context>

<pallas_src>
import functools

import jax
import jax.numpy as jnp
from jax.experimental import pallas as pl
from jax.experimental.pallas import tpu as pltpu


def rwkv_cross_attn_kernel(kv_ref, r_ref, wkvw_ref, o_ref, *, out_flat):
    # kv_ref:   (block_b, T, C)   batched kv tile (bf16 or f32)
    # r_ref:    (nq, C)           precomputed sigmoid(q @ Wr^T), f32, resident
    # wkvw_ref: (C, 3C)           fused [Wk^T | Wv^T | Wdecay^T], resident
    # o_ref:    (block_b, nq*C)   if out_flat else (block_b, nq, C)
    block_b, T, C = kv_ref.shape

    # Single fused projection matmul on the MXU, f32 accumulation.
    kv2d = kv_ref[...].reshape(block_b * T, C)                           # [Bb*T, C]
    proj = jnp.dot(kv2d, wkvw_ref[...],
                   preferred_element_type=jnp.float32)                   # [Bb*T, 3C] f32

    k = proj[:, :C]
    v = proj[:, C:2 * C]
    w = proj[:, 2 * C:]

    ew = jnp.exp(-jnp.maximum(w, 0.0))                                   # exp(-relu(w)), f32
    s = jnp.sum((k * v * ew).reshape(block_b, T, C), axis=1)             # [Bb, C] f32

    r = r_ref[...]                                                       # [nq, C] f32
    out = s[:, None, :] * r[None, :, :]                                  # [Bb, nq, C] f32

    if out_flat:
        o_ref[...] = out.reshape(block_b, -1).astype(o_ref.dtype)
    else:
        o_ref[...] = out.astype(o_ref.dtype)


def fuse_rwkv_cross_attention_params(query, w_key, w_value, w_receptance,
                                     w_time_decay, *, mxu_dtype=jnp.bfloat16):
    """One-time (per parameter update) fusion; keep OUT of the hot step fn.

    Returns:
      wkvw: [C, 3C] fused, pre-transposed kv-side projection weight (mxu_dtype)
      r:    [nq, C] batch-invariant sigmoid(q @ Wr^T), f32
    """
    wkvw = jnp.concatenate([w_key.T, w_value.T, w_time_decay.T],
                           axis=1).astype(mxu_dtype)                     # [C, 3C]
    r = jax.nn.sigmoid(
        jnp.dot(query[0], w_receptance.T,
                preferred_element_type=jnp.float32)).astype(jnp.float32) # [nq, C]
    return wkvw, r


def _pick_block_b(B, T, flatten_out, target_rows=512):
    """Batches per grid step: block_b*T ~ target_rows (fills the MXU M dim and
    amortizes per-step overhead), prefer a divisor of B (no padded tail block),
    keep >=2 grid steps when there's enough work (so v7x's 2 TCs both run)."""
    bb = max(1, target_rows // max(T, 1))
    if bb >= B:
        if B >= 2 and (B // 2) * T >= 256:
            bb = (B + 1) // 2          # split for megacore / 2-TC sharding
        else:
            return B
    if bb >= B:
        return B
    # Prefer the largest divisor of B <= bb: the tail block never reads
    # undefined padded kv rows.
    for d in range(bb, 0, -1):
        if B % d == 0:
            bb = d
            break
    if flatten_out and bb != B and bb % 8 != 0:
        # Flattened 2-D output block needs block_b % 8 == 0 (sublane rule).
        bb8 = (bb // 8) * 8
        bb = bb8 if (bb8 >= 8 and B % bb8 == 0) else B
    return bb


def _vmem_bytes_estimate(block_b, T, C, nq, kv_itemsize, out_itemsize,
                         kv_buffers):
    kv_tile = kv_buffers * block_b * T * C * kv_itemsize       # pipelined kv
    w_res = 2 * C * 3 * C * kv_itemsize                        # resident fused weight
    r_res = 2 * nq * C * 4                                     # resident receptance
    out_tile = 2 * block_b * nq * C * out_itemsize             # output double-buffer
    proj = block_b * T * 3 * C * 4                             # f32 matmul result
    return kv_tile + w_res + r_res + out_tile + proj


def rwkv_cross_attention_fused(kv_feats, wkvw, r, *, block_b=None,
                               kv_buffers=2):
    """Hot path: kv_feats [B,T,C], fused wkvw [C,3C], r [nq,C] -> [B,nq,C]."""
    B, T, C = kv_feats.shape
    nq = r.shape[0]
    out_dtype = kv_feats.dtype

    # MXU operands in the fused-weight dtype (bf16 by default); f32 accumulate.
    kv_mxu = kv_feats.astype(wkvw.dtype)

    flatten_out = (C % 128) != 0          # lane-flatten only for the toy case
    if block_b is None:
        block_b = _pick_block_b(B, T, flatten_out)
    grid = (pl.cdiv(B, block_b),)

    kv_itemsize = jnp.dtype(kv_mxu.dtype).itemsize
    out_itemsize = jnp.dtype(out_dtype).itemsize
    vmem_limit = int(min(max(2 * _vmem_bytes_estimate(
        block_b, T, C, nq, kv_itemsize, out_itemsize, kv_buffers),
        32 << 20), 128 << 20))

    cost = pl.CostEstimate(
        flops=int(2 * B * T * C * (3 * C) + 4 * B * T * C + B * nq * C),
        transcendentals=int(B * T * C),
        bytes_accessed=int(B * T * C * kv_itemsize + C * 3 * C * kv_itemsize
                           + nq * C * 4 + B * nq * C * out_itemsize),
    )

    kv_spec_kwargs = {}
    if kv_buffers != 2:
        kv_spec_kwargs["pipeline_mode"] = pl.Buffered(kv_buffers)
    kv_spec = pl.BlockSpec((block_b, T, C), lambda i: (i, 0, 0),
                           **kv_spec_kwargs)

    if flatten_out:
        out_shape = jax.ShapeDtypeStruct((B, nq * C), out_dtype)
        out_spec = pl.BlockSpec((block_b, nq * C), lambda i: (i, 0))
    else:
        out_shape = jax.ShapeDtypeStruct((B, nq, C), out_dtype)
        out_spec = pl.BlockSpec((block_b, nq, C), lambda i: (i, 0, 0))

    out = pl.pallas_call(
        functools.partial(rwkv_cross_attn_kernel, out_flat=flatten_out),
        out_shape=out_shape,
        grid_spec=pltpu.PrefetchScalarGridSpec(
            num_scalar_prefetch=0,
            grid=grid,
            in_specs=[
                kv_spec,                                           # kv tile
                pl.BlockSpec((nq, C), lambda i: (0, 0)),           # r (resident)
                pl.BlockSpec((C, 3 * C), lambda i: (0, 0)),        # fused weights
            ],
            out_specs=out_spec,
        ),
        compiler_params=pltpu.CompilerParams(
            dimension_semantics=("parallel",),
            vmem_limit_bytes=vmem_limit),
        cost_estimate=cost,
    )(kv_mxu, r, wkvw)

    return out.reshape(B, nq, C)


def rwkv_cross_attention(kv_feats, query, w_key, w_value, w_receptance,
                         w_time_decay, *, block_b=None,
                         mxu_dtype=jnp.bfloat16):
    """Convenience one-shot entry (fuses params per call; prefer fusing once
    with fuse_rwkv_cross_attention_params + rwkv_cross_attention_fused)."""
    wkvw, r = fuse_rwkv_cross_attention_params(
        query, w_key, w_value, w_receptance, w_time_decay, mxu_dtype=mxu_dtype)
    return rwkv_cross_attention_fused(kv_feats, wkvw, r, block_b=block_b)


def rwkv_cross_attention_ref(kv_feats, query, w_key, w_value, w_receptance,
                             w_time_decay):
    """Pure-JAX reference mirroring the PyTorch forward."""
    B = kv_feats.shape[0]
    q = jnp.broadcast_to(query, (B,) + query.shape[1:])
    k = kv_feats @ w_key.T
    v = kv_feats @ w_value.T
    w = kv_feats @ w_time_decay.T
    ew = jnp.exp(-jax.nn.relu(w))
    r = jax.nn.sigmoid(q @ w_receptance.T)
    weighted_kv = k * v * ew
    return r * jnp.sum(weighted_kv, axis=1, keepdims=True)


if __name__ == "__main__":
    # Small shapes consistent with the module: B=2, T=8, dim=32, n_query=1.
    B, T, C, NQ = 2, 8, 32, 1

    key = jax.random.PRNGKey(0)
    k_kv, k_q, k_wk, k_wv, k_wr, k_wd = jax.random.split(key, 6)

    kv_feats = jax.random.normal(k_kv, (B, T, C), dtype=jnp.float32)

    # Deterministic parameters (shapes from __init__):
    #   query: [1, n_query, dim]; Linear weights: [dim, dim] each (no bias).
    query = jax.random.normal(k_q, (1, NQ, C), dtype=jnp.float32)
    scale = 1.0 / jnp.sqrt(jnp.float32(C))
    w_key = jax.random.uniform(k_wk, (C, C), jnp.float32, -scale, scale)
    w_value = jax.random.uniform(k_wv, (C, C), jnp.float32, -scale, scale)
    w_receptance = jax.random.uniform(k_wr, (C, C), jnp.float32, -scale, scale)
    w_time_decay = jax.random.uniform(k_wd, (C, C), jnp.float32, -scale, scale)

    # Fuse once (outside the hot path), then run the kernel.
    wkvw, r = fuse_rwkv_cross_attention_params(
        query, w_key, w_value, w_receptance, w_time_decay)
    out = rwkv_cross_attention_fused(kv_feats, wkvw, r)
    out = jax.block_until_ready(out)

    # Reference with the same bf16 quantization of the MXU operands (the
    # epilogue and receptance stay f32, matching the kernel).
    kv_bf = kv_feats.astype(jnp.bfloat16).astype(jnp.float32)
    wk_bf = w_key.astype(jnp.bfloat16).astype(jnp.float32)
    wv_bf = w_value.astype(jnp.bfloat16).astype(jnp.float32)
    wd_bf = w_time_decay.astype(jnp.bfloat16).astype(jnp.float32)
    ref = rwkv_cross_attention_ref(kv_bf, query, wk_bf, wv_bf,
                                   w_receptance, wd_bf)

    assert out.shape == (B, NQ, C), out.shape
    assert jnp.allclose(out, ref, atol=1e-3, rtol=1e-3), \
        float(jnp.max(jnp.abs(out - ref)))

    print("KERNEL_OK")
</pallas_src>

<mosaic_0001>
module attributes {stable_mosaic.version = 11 : i64} {
  func.func @rwkv_cross_attn_kernel(%arg0: i32, %arg1: memref<2x8x32xbf16, #tpu.memory_space<vmem>>, %arg2: memref<1x32xf32, #tpu.memory_space<vmem>>, %arg3: memref<32x96xbf16, #tpu.memory_space<vmem>>, %arg4: memref<2x32xf32, #tpu.memory_space<vmem>>) attributes {dimension_semantics = [#tpu.dimension_semantics<parallel>], iteration_bounds = array<i64: 1>, scalar_prefetch = 0 : i64, scratch_operands = 0 : i64, tpu.core_type = #tpu.core_type<tc>, window_params = [{transform_indices = @transform_0, window_bounds = array<i64: 2, 8, 32>}, {pipeline_mode = #tpu.pipeline_mode<synchronous>, transform_indices = @transform_1, window_bounds = array<i64: 1, 32>}, {pipeline_mode = #tpu.pipeline_mode<synchronous>, transform_indices = @transform_2, window_bounds = array<i64: 32, 96>}, {transform_indices = @transform_3, window_bounds = array<i64: 2, 32>}]} {
    %c0 = arith.constant 0 : index
    %c0_0 = arith.constant 0 : index
    %c0_1 = arith.constant 0 : index
    %0 = vector.load %arg1[%c0, %c0_0, %c0_1] : memref<2x8x32xbf16, #tpu.memory_space<vmem>>, vector<2x8x32xbf16>
    %1 = vector.shape_cast %0 : vector<2x8x32xbf16> to vector<16x32xbf16>
    %c0_2 = arith.constant 0 : index
    %c0_3 = arith.constant 0 : index
    %2 = vector.load %arg3[%c0_2, %c0_3] : memref<32x96xbf16, #tpu.memory_space<vmem>>, vector<32x96xbf16>
    %cst = arith.constant dense<0.000000e+00> : vector<16x96xf32>
    %3 = tpu.matmul %1, %2, %cst {dimension_numbers = #tpu.dot_dimension_numbers<[1], [0], [0], [1], [0, 0, 1, 1], [], []>} : vector<16x32xbf16>, vector<32x96xbf16>, vector<16x96xf32> -> vector<16x96xf32>
    %4 = vector.extract_strided_slice %3 {offsets = [0, 0], sizes = [16, 32], strides = [1, 1]} : vector<16x96xf32> to vector<16x32xf32>
    %5 = vector.extract_strided_slice %3 {offsets = [0, 32], sizes = [16, 32], strides = [1, 1]} : vector<16x96xf32> to vector<16x32xf32>
    %6 = vector.extract_strided_slice %3 {offsets = [0, 64], sizes = [16, 32], strides = [1, 1]} : vector<16x96xf32> to vector<16x32xf32>
    %cst_4 = arith.constant 0.000000e+00 : f32
    %7 = vector.broadcast %cst_4 : f32 to vector<16x32xf32>
    %8 = arith.maximumf %6, %7 : vector<16x32xf32>
    %cst_5 = arith.constant 0.000000e+00 : f32
    %9 = vector.broadcast %cst_5 : f32 to vector<16x32xf32>
    %10 = arith.subf %9, %8 : vector<16x32xf32>
    %11 = math.exp %10 : vector<16x32xf32>
    %12 = arith.mulf %4, %5 : vector<16x32xf32>
    %13 = arith.mulf %12, %11 : vector<16x32xf32>
    %14 = vector.shape_cast %13 : vector<16x32xf32> to vector<2x8x32xf32>
    %cst_6 = arith.constant dense<0.000000e+00> : vector<2x32xf32>
    %15 = vector.multi_reduction <add>, %14, %cst_6 [1] : vector<2x8x32xf32> to vector<2x32xf32>
    %c0_7 = arith.constant 0 : index
    %c0_8 = arith.constant 0 : index
    %16 = vector.load %arg2[%c0_7, %c0_8] : memref<1x32xf32, #tpu.memory_space<vmem>>, vector<1x32xf32>
    %17 = vector.shape_cast %15 : vector<2x32xf32> to vector<2x1x32xf32>
    %18 = vector.shape_cast %16 : vector<1x32xf32> to vector<1x1x32xf32>
    %19 = vector.broadcast %18 : vector<1x1x32xf32> to vector<2x1x32xf32>
    %20 = arith.mulf %17, %19 : vector<2x1x32xf32>
    %21 = vector.shape_cast %20 : vector<2x1x32xf32> to vector<2x32xf32>
    %c0_9 = arith.constant 0 : index
    %c0_10 = arith.constant 0 : index
    %22 = vector.load %arg4[%c0_9, %c0_10] : memref<2x32xf32, #tpu.memory_space<vmem>>, vector<2x32xf32>
    tpu.vector_store %arg4[%c0_9, %c0_10], %21 {strides = array<i32>} : memref<2x32xf32, #tpu.memory_space<vmem>>, vector<2x32xf32>,
    return
  }
  func.func @transform_0(%arg0: i32) -> (i32, i32, i32) {
    %c0_i32 = arith.constant 0 : i32
    %c0_i32_0 = arith.constant 0 : i32
    %c0_i32_1 = arith.constant 0 : i32
    return %arg0, %c0_i32, %c0_i32_0 : i32, i32, i32
  }
  func.func @transform_1(%arg0: i32) -> (i32, i32) {
    %c0_i32 = arith.constant 0 : i32
    %c0_i32_0 = arith.constant 0 : i32
    %c0_i32_1 = arith.constant 0 : i32
    return %c0_i32, %c0_i32_0 : i32, i32
  }
  func.func @transform_2(%arg0: i32) -> (i32, i32) {
    %c0_i32 = arith.constant 0 : i32
    %c0_i32_0 = arith.constant 0 : i32
    %c0_i32_1 = arith.constant 0 : i32
    return %c0_i32, %c0_i32_0 : i32, i32
  }
  func.func @transform_3(%arg0: i32) -> (i32, i32) {
    %c0_i32 = arith.constant 0 : i32
    %c0_i32_0 = arith.constant 0 : i32
    return %arg0, %c0_i32 : i32, i32
  }
}

</mosaic_0001>

<bundles_post_ra>
// kernel: tpu_custom_call.1
= control target key start
LH: loop header
LB: loop body
LE: loop exit
PB: predicated region body
PF: predicated region fallthrough
CT: control target
= control target key end

     0   :  { %8 = vsyncpa [#allocation3], 0  ;;  %s350_s0 = inlined_call_operand.hbm [shape: bf16[2,8,32], index: 0, kind: input, shape index: {}]   ;;  %s351_s1 = inlined_call_operand.hbm [shape: f32[1,32], index: 1, kind: input, shape index: {}]   ;;  %s352_s2 = inlined_call_operand.hbm [shape: bf16[32,96], index: 2, kind: input, shape index: {}]   ;;  %s353_s3 = inlined_call_operand.hbm [shape: f32[2,32], index: 3, kind: output, shape index: {}]  }
   0x1   :  { %9 = vsyncpa [#allocation6], 0  ;;  %s29_s14 = sshll.u32 %s351_s1, 4  ;;  %s30_s14 = int_to_ptr.hbm [resolvable:$true] %s29_s14 }
   0x2   :  { %10 = vsyncpa [#allocation4], 0  ;;  %s302_s15 = smov [#allocation5]   ;;  %s15_s19 = sshll.u32 %s350_s0, 4  ;;  %s16_s19 = int_to_ptr.hbm [resolvable:$true] %s15_s19 }
   0x3   :  { %s31_s16 = sshll.u32 %s302_s15, 4  ;;  %s303_s20 = smov [#allocation2]   ;;  %s32_s16 = int_to_ptr.vmem [resolvable:$true] %s31_s16 }
   0x4   :  { %34 = dma.hbm_to_vmem [thread:$0]  %s30_s14, 16, %s32_s16, [#allocation6]  }
   0x5   :  { %s17_s21 = sshll.u32 %s303_s20, 4  ;;  %s304_s22 = smov 64   ;;  %s18_s21 = int_to_ptr.vmem [resolvable:$true] %s17_s21 }
   0x6   :  { %s305_s23 = smov 4   ;;  %s39_s25 = sshll.u32 %s352_s2, 4  ;;  %s40_s25 = int_to_ptr.hbm [resolvable:$true] %s39_s25 }
   0x7   :  { %23 = dma.hbm_to_vmem [thread:$0]  %s16_s19, 128, %s18_s21, [#allocation3], %s304_s22, %s304_s22, %s305_s23  }
   0x8   :  { %s306_s26 = smov [#allocation7]  }
   0x9   :  { %s41_s27 = sshll.u32 %s306_s26, 4  ;;  %s42_s27 = int_to_ptr.vmem [resolvable:$true] %s41_s27 }
   0xa   :  { %47 = dma.hbm_to_vmem [thread:$0]  %s40_s25, 256, %s42_s27, [#allocation6], %s304_s22, %s304_s22, %s305_s23  }
   0xb   :  { %296 = dma.done.wait [#allocation3], 128  }
   0xc   :  { %297 = vsyncadd [#allocation3], 4294967168 }
   0xd   :  { %298 = dma.done.wait [#allocation6], 272  }
   0xe   :  { %299 = vsyncadd [#allocation6], 4294967024  ;;  %v188_v0 = vld [vmem:[#allocation7 + $0x8] sm:$0xff]  ;;  %v187_v1 = vld [vmem:[#allocation7] sm:$0xff]  ;;  %vm84_vm0 = vcmask 261120   ;;  %s307_s0 = smov 96  }
   0xf   :  { %94 = vmatpush.bf16.msra.mxu0 %v188_v0  ;;  %v186_v2 = vld [vmem:[#allocation2] sm:$0xff]  ;;  %v144_v32 = vld [vmem:[#allocation5] sm:$0x1]  ;;  %s308_s2 = smov [#allocation8]   ;;  %s162_s4 = sshll.u32 %s353_s3, 4  ;;  %vm150_vm1 = vcmask 1041409   ;;  %s163_s4 = int_to_ptr.hbm [resolvable:$true] %s162_s4 }
  0x10   :  { %s160_s28 = sshll.u32 %s308_s2, 4  ;;  %vm153_vm2 = vcmask 254976   ;;  %s161_s28 = int_to_ptr.vmem [resolvable:$true] %s160_s28 }
  0x13   :  { %95 = vmatpush.bf16.msra.mxu0 %v187_v1 }
  0x16   :  { %185 = vmatmul.msk.bf16.vlgmr.msra.gmra.mxu0 %vm84_vm0, %v186_v2 }
  0x93   :  { %v97_v3 = vpop.f32.mrf.mxu0 }
  0x94   :  { %v102_v6 = vmax.f32 %v97_v3, 0.0 }
  0x96   :  { %v104_v9 = vsub.f32 0.0, %v102_v6 }
  0x98   :  { %v106_v10 = vmul.f32 1.442695, %v104_v9 }
  0x9b   :  { %v99_v4 = vpop.f32.mrf.mxu0 }
  0x9c   :  { %v103_v5 = vmax.f32 %v99_v4, 0.0  ;;  %114 = vrot.lane.b32.xlu0 %v99_v4, %s307_s0 }
  0x9e   :  { %v105_v7 = vsub.f32 0.0, %v103_v5 }
  0xa0   :  { %v108_v8 = vmul.f32 1.442695, %v105_v7 }
  0xa2   :  { %196 = vpow2.f32 %v108_v8 }
  0xa3   :  { %198 = vpow2.f32 %v106_v10 }
  0xa4   :  { %112 = vrot.lane.b32.xlu0 %v97_v3, %s307_s0 }
  0xa8   :  { %v197_v11 = vpop.eup %196 }
  0xa9   :  { %124 = vrot.lane.b32.xlu1 %v197_v11, %s304_s22  ;;  %v199_v12 = vpop.eup %198 }
  0xb1   :  { %122 = vrot.lane.b32.xlu1 %v199_v12, %s304_s22 }
 0x10e   :  { %v115_v13 = vpop.permute.xlu0 %114 }
 0x10f   :  { %v119_v14 = vmul.f32 %v115_v13, %v99_v4 }
 0x116   :  { %v113_v18 = vpop.permute.xlu0 %112 }
 0x117   :  { %v118_v21 = vmul.f32 %v113_v18, %v97_v3 }
 0x11b   :  { %v125_v15 = vpop.permute.xlu1 %124 }
 0x11c   :  { %v129_v16 = vmul.f32 %v125_v15, %v119_v14 }
 0x11e   :  { %v137_v17 = vsel %vm84_vm0, %v129_v16, 0.0 }
 0x11f   :  { %v138_v19 = vrot.slane %v137_v17, 4 }
 0x121   :  { %v139_v20 = vadd.f32 %v138_v19, %v137_v17 }
 0x123   :  { %v140_v22 = vrot.slane %v139_v20, 2  ;;  %v123_v23 = vpop.permute.xlu1 %122 }
 0x124   :  { %v128_v24 = vmul.f32 %v123_v23, %v118_v21 }
 0x125   :  { %v141_v25 = vadd.f32 %v140_v22, %v139_v20 }
 0x126   :  { %v130_v26 = vsel %vm84_vm0, %v128_v24, 0.0 }
 0x127   :  { %v142_v27 = vrot.slane %v141_v25, 1  ;;  %v131_v28 = vrot.slane %v130_v26, 4 }
 0x129   :  { %v132_v29 = vadd.f32 %v131_v28, %v130_v26  ;;  %v143_v30 = vadd.f32 %v142_v27, %v141_v25 }
 0x12b   :  { %v133_v31 = vrot.slane %v132_v29, 2  ;;  %v146_v34 = vmul.f32 %v144_v32, %v143_v30 }
 0x12d   :  { %v134_v33 = vadd.f32 %v133_v31, %v132_v29  ;;  %v149_v37 = vrot.slane %v146_v34, 7 }
 0x12f   :  { %v135_v35 = vrot.slane %v134_v33, 1 }
 0x131   :  { %v136_v36 = vadd.f32 %v135_v35, %v134_v33 }
 0x133   :  { %v145_v38 = vmul.f32 %v144_v32, %v136_v36 }
 0x135   :  { %v151_v39 = vsel %vm150_vm1, %v149_v37, %v145_v38 }
 0x136   :  { %154 = vst.msk [vmem:[#allocation8] sm:$0x3] %vm153_vm2, %v151_v39 }
 0x137   :  { %165 = dma.vmem_to_hbm [thread:$0]  %s161_s28, 32, %s163_s4, [#allocation4]  }
 0x138   :  { %300 = dma.done.wait [#allocation4], 32  }
 0x139   :  { %301 = vsyncadd [#allocation4], 4294967264 }
 0x13a   :  { %170 = vsyncpa [#allocation3], 1 }
 0x13b   :  { %171 = vsyncpa [#allocation6], 1 }
 0x13c   :  { %172 = vsyncpa [#allocation4], 1 }

</bundles_post_ra>
